<compile_context>
chip_gen: v7x
topology: tpu7x:2x2x1
jax: 0.10.0
libtpu: 0.0.40
codegen_flags: <defaults>
</compile_context>

<pallas_src>
import jax
import jax.numpy as jnp
from jax.experimental import pallas as pl
from jax.experimental.pallas import tpu as pltpu


def _fused_linear_t_kernel(w_ref, b_ref, xt_ref, ot_ref):
    # One MXU dot (K = 4) + VPU broadcast bias add.  Batch sits on the lane
    # axis of both xt and the output, so loads/stores are lane-dense.
    ot_ref[...] = (
        jnp.dot(w_ref[...], xt_ref[...], preferred_element_type=jnp.float32)
        + b_ref[...]
    )


def fuse_params(wi, bi, wo, bo):
    """Fold inner-applied-twice + outer into one transposed weight and bias.

    wi: (4, 4) [out, in], bi: (4,), wo: (5, 4) [out, in], bo: (5,).
    Returns W_eff^T (5, 4) and b_eff as a (5, 1) column.  Done ONCE,
    outside the hot path.
      out^T = (2 * Wo @ Wi) @ x^T + (2 * Wo @ bi + bo)[:, None]
    """
    w_eff_t = 2.0 * (wo @ wi)                   # (5, 4) == W_eff^T
    b_eff = (2.0 * bi) @ wo.T + bo              # (5,)
    return w_eff_t, b_eff.reshape(-1, 1)        # (5, 4), (5, 1)


def _pick_batch_tile(B):
    """Batch tile along the lane axis: full B when small; else a multiple of
    128, capped at 8192, and <= B/2 so the parallel grid has >= 2 steps
    (uses both TensorCores on v7x).  VMEM is never the constraint here."""
    if B <= 256:
        return B                                # full dim -> valid block shape
    tb = min(8192, ((B // 2) // 128) * 128)
    return max(tb, 128)


def model_forward(x, w_eff_t, b_eff_col, *, tb=None):
    """x: (B, 4) f32.  w_eff_t: (5, 4).  b_eff_col: (5, 1).  Returns (B, 5)."""
    B, d_in = x.shape
    d_out = w_eff_t.shape[0]

    if tb is None:
        tb = _pick_batch_tile(B)
    grid = (pl.cdiv(B, tb),)

    # Layout plumbing only: put the batch on the (fast) lane axis.
    x_t = x.T                                   # (4, B)

    cost = pl.CostEstimate(
        flops=2 * B * d_in * d_out,
        transcendentals=0,
        bytes_accessed=4 * (B * d_in + B * d_out + d_in * d_out + d_out),
    )

    out_t = pl.pallas_call(
        _fused_linear_t_kernel,
        out_shape=jax.ShapeDtypeStruct((d_out, B), jnp.float32),
        grid=grid,
        in_specs=[
            pl.BlockSpec((d_out, d_in), lambda i: (0, 0)),  # W_eff^T: resident
            pl.BlockSpec((d_out, 1), lambda i: (0, 0)),     # bias col: resident
            pl.BlockSpec((d_in, tb), lambda i: (0, i)),     # x^T: tiled on lanes
        ],
        out_specs=pl.BlockSpec((d_out, tb), lambda i: (0, i)),  # out^T: lane-dense
        compiler_params=pltpu.CompilerParams(
            dimension_semantics=("parallel",),
        ),
        cost_estimate=cost,
    )(w_eff_t, b_eff_col, x_t)

    return out_t.T                              # (B, 5)


def _init_linear(key, out_features, in_features):
    # Deterministic init mimicking torch.nn.Linear's uniform(-1/sqrt(fan_in), +...).
    kw, kb = jax.random.split(key)
    bound = 1.0 / (in_features ** 0.5)
    w = jax.random.uniform(kw, (out_features, in_features), jnp.float32,
                           minval=-bound, maxval=bound)
    b = jax.random.uniform(kb, (out_features,), jnp.float32,
                           minval=-bound, maxval=bound)
    return w, b


if __name__ == "__main__":
    key = jax.random.PRNGKey(0)
    k_x, k_inner, k_outer = jax.random.split(key, 3)

    B = 8
    x = jax.random.normal(k_x, (B, 4), jnp.float32)

    wi, bi = _init_linear(k_inner, 4, 4)   # inner: Linear(4, 4)
    wo, bo = _init_linear(k_outer, 5, 4)   # outer: Linear(4, 5)

    # TODO(synk): FSDP/DDP sharding wrappers are training infra with no
    # forward-math content; only the plain Linear forward is implemented.

    # Parameter fusion happens once, outside the per-call path.
    w_eff_t, b_eff_col = fuse_params(wi, bi, wo, bo)

    y = model_forward(x, w_eff_t, b_eff_col)
    y = jax.block_until_ready(y)

    # Reference check in plain JAX with the ORIGINAL (unfused) math.
    h = x @ wi.T + bi
    ref = (h + h) @ wo.T + bo
    assert y.shape == (B, 5)
    assert jnp.allclose(y, ref, atol=1e-5, rtol=1e-5), "mismatch vs reference"

    print("KERNEL_OK")
</pallas_src>

<mosaic_0001>
module attributes {stable_mosaic.version = 11 : i64} {
  func.func @_fused_linear_t_kernel(%arg0: i32, %arg1: memref<5x4xf32, #tpu.memory_space<vmem>>, %arg2: memref<5x1xf32, #tpu.memory_space<vmem>>, %arg3: memref<4x8xf32, #tpu.memory_space<vmem>>, %arg4: memref<5x8xf32, #tpu.memory_space<vmem>>) attributes {dimension_semantics = [#tpu.dimension_semantics<parallel>], iteration_bounds = array<i64: 1>, scalar_prefetch = 0 : i64, scratch_operands = 0 : i64, tpu.core_type = #tpu.core_type<tc>, window_params = [{pipeline_mode = #tpu.pipeline_mode<synchronous>, transform_indices = @transform_0, window_bounds = array<i64: 5, 4>}, {pipeline_mode = #tpu.pipeline_mode<synchronous>, transform_indices = @transform_1, window_bounds = array<i64: 5, 1>}, {transform_indices = @transform_2, window_bounds = array<i64: 4, 8>}, {transform_indices = @transform_3, window_bounds = array<i64: 5, 8>}]} {
    %c0 = arith.constant 0 : index
    %c0_0 = arith.constant 0 : index
    %0 = vector.load %arg1[%c0, %c0_0] : memref<5x4xf32, #tpu.memory_space<vmem>>, vector<5x4xf32>
    %c0_1 = arith.constant 0 : index
    %c0_2 = arith.constant 0 : index
    %1 = vector.load %arg3[%c0_1, %c0_2] : memref<4x8xf32, #tpu.memory_space<vmem>>, vector<4x8xf32>
    %cst = arith.constant dense<0.000000e+00> : vector<5x8xf32>
    %2 = tpu.matmul %0, %1, %cst {dimension_numbers = #tpu.dot_dimension_numbers<[1], [0], [0], [1], [0, 0, 1, 1], [], []>} : vector<5x4xf32>, vector<4x8xf32>, vector<5x8xf32> -> vector<5x8xf32>
    %c0_3 = arith.constant 0 : index
    %c0_4 = arith.constant 0 : index
    %3 = vector.load %arg2[%c0_3, %c0_4] : memref<5x1xf32, #tpu.memory_space<vmem>>, vector<5x1xf32>
    %4 = vector.broadcast %3 : vector<5x1xf32> to vector<5x8xf32>
    %5 = arith.addf %2, %4 : vector<5x8xf32>
    %c0_5 = arith.constant 0 : index
    %c0_6 = arith.constant 0 : index
    %6 = vector.load %arg4[%c0_5, %c0_6] : memref<5x8xf32, #tpu.memory_space<vmem>>, vector<5x8xf32>
    tpu.vector_store %arg4[%c0_5, %c0_6], %5 {strides = array<i32>} : memref<5x8xf32, #tpu.memory_space<vmem>>, vector<5x8xf32>,
    return
  }
  func.func @transform_0(%arg0: i32) -> (i32, i32) {
    %c0_i32 = arith.constant 0 : i32
    %c0_i32_0 = arith.constant 0 : i32
    %c0_i32_1 = arith.constant 0 : i32
    return %c0_i32, %c0_i32_0 : i32, i32
  }
  func.func @transform_1(%arg0: i32) -> (i32, i32) {
    %c0_i32 = arith.constant 0 : i32
    %c0_i32_0 = arith.constant 0 : i32
    %c0_i32_1 = arith.constant 0 : i32
    return %c0_i32, %c0_i32_0 : i32, i32
  }
  func.func @transform_2(%arg0: i32) -> (i32, i32) {
    %c0_i32 = arith.constant 0 : i32
    %c0_i32_0 = arith.constant 0 : i32
    return %c0_i32, %arg0 : i32, i32
  }
  func.func @transform_3(%arg0: i32) -> (i32, i32) {
    %c0_i32 = arith.constant 0 : i32
    %c0_i32_0 = arith.constant 0 : i32
    return %c0_i32, %arg0 : i32, i32
  }
}

</mosaic_0001>

<bundles_post_ra>
// kernel: tpu_custom_call.1
= control target key start
LH: loop header
LB: loop body
LE: loop exit
PB: predicated region body
PF: predicated region fallthrough
CT: control target
= control target key end

     0   :  { %vm27_vm0 = vcmask 1043456   ;;  %vm23_vm1 = vcmask 31744   ;;  %v155_v1 = vmov 0.0   ;;  %vm156_vm2 = vmmov 0   ;;  %s200_s0 = inlined_call_operand.vmem [shape: f32[5,4], index: 0, kind: input, shape index: {}]   ;;  %s201_s1 = inlined_call_operand.vmem [shape: f32[5,1], index: 1, kind: input, shape index: {}]   ;;  %s202_s2 = inlined_call_operand.vmem [shape: f32[4,8], index: 2, kind: input, shape index: {}]   ;;  %s203_s3 = inlined_call_operand.hbm [shape: f32[5,8], index: 3, kind: output, shape index: {}]  }
   0x1   :  { %v16_v0 = vld [vmem:[%s202_s2] sm:$0xf]  ;;  %121 = vmatprep.subr.mxu0 %v155_v1  ;;  %123 = vmatprep.mubr.msk.f32.mxu0 %vm156_vm2, %v155_v1  ;;  %v157_v4 = vmov 0  }
   0x2   :  { %v15_v2 = vld [vmem:[%s200_s0] sm:$0x1f]  ;;  %122 = vmatpush3.msk.msra.mxu0 %vm27_vm0, %v16_v0  ;;  %130 = vset.pattern.permute.xlu0 %v157_v4 }
   0x3   :  { %v17_v3 = vld [vmem:[%s201_s1] sm:$0x1f] }
   0x4   :  { %8 = vsyncpa [#allocation3], 0  ;;  %124 = vmatmul.mubr.msk.f32.vlgmr.msra.gmra.mrb[0].mxu0 %vm23_vm1, %v15_v2  ;;  %20 = vperm.xlu0 %130, %v17_v3   ;;  %s158_s2 = smov [#allocation2]   ;;  %vm101_vm3 = vcmask 61440  }
   0x5   :  { %s109_s18 = sshll.u32 %s158_s2, 4  ;;  %s110_s18 = int_to_ptr.vmem [resolvable:$true] %s109_s18 }
   0x6   :  { %s131_s0 = scalar_lea.vmem %s110_s18, 128  ;;  %p136_p1 = scmp.lt.s32.totalorder %s110_s18, %s110_s18 }
   0x7   :  { %p132_p0 = scmp.ne.s32.totalorder %s110_s18, %s131_s0  ;;  %p137_p2 = scmp.lt.s32.totalorder %s131_s0, %s131_s0 }
   0x9   :  { %p138_p3 = por %p137_p2, %p136_p1 }
   0xb   :  { %p139_p4 = pnand %p138_p3, %p132_p0 }
  0x83   :  { %v21_v5 = vpop.permute.xlu0 %20 }
  0xd7   :  { %v97_v6 = vpop.f32.mrb[0].mxu0 }
  0xd8   :  { %v98_v7 = vadd.f32 %v97_v6, %v21_v5  ;;  %v125_v8 = vpop.f32.mrb[1].mxu0 }
  0xda   :  { %102 = vst.msk [vmem:[#allocation2] sm:$0x1f] %vm101_vm3, %v98_v7 }
  0xdb   :  { %142 = shalt.err (!%p139_p4)
}
  0xdc   :  { %s143_s20 = scalar_lea.hbm %s203_s3, 128 }
  0xdd   :  { %p144_p5 = scmp.ne.s32.totalorder %s203_s3, %s143_s20  ;;  %p147_p6 = scmp.lt.u32.totalorder %s143_s20, %s203_s3 }
  0xdf   :  { %p149_p7 = pnand %p147_p6, %p144_p5 }
  0xe1   :  { %152 = shalt.err (!%p149_p7)
}
  0xe2   :  { %112 = dma.vmem_to_hbm [thread:$0]  %s110_s18, 128, %s203_s3, [#allocation3]  }
  0xe3   :  { %153 = dma.done.wait [#allocation3], 128  }
  0xe4   :  { %154 = vsyncadd [#allocation3], 4294967168 }
  0xe5   :  { %116 = vsyncpa [#allocation3], 1 }

</bundles_post_ra>
